<compile_context>
chip_gen: v7x
topology: tpu7x:2x2x1
jax: 0.10.0
libtpu: 0.0.40
codegen_flags: <defaults>
</compile_context>

<pallas_src>
import functools

import jax
import jax.numpy as jnp
from jax.experimental import pallas as pl
from jax.experimental.pallas import tpu as pltpu

KERNEL_SIZE = 5
PAD = 2
LANE = 128


def _round_up(x, m):
    return ((x + m - 1) // m) * m


def _cnn_fused_kernel(x_ref, w_ref, b_ref, o_ref, a_pad, *, num_layers):
    """Fused conv stack + sum-over-time for one batch block.

    x_ref : (B_blk, T, C)         channel-padded input block (channels last)
    w_ref : (L, K*C, C)           im2col weights per layer (tap-major rows)
    b_ref : (L, 1, C)             bias per layer (f32)
    o_ref : (1, B_blk, C)         time-summed output block
    a_pad : (B_blk, T+2*PAD, C)   f32 VMEM scratch: time-padded activation,
                                  halo rows stay zero across layers
    """
    B_blk, T, C = x_ref.shape

    # Zero halo once, load the input block; activation stays VMEM-resident.
    a_pad[...] = jnp.zeros_like(a_pad)
    a_pad[:, PAD:PAD + T, :] = x_ref[...].astype(jnp.float32)

    for l in range(num_layers):  # static unroll; num_layers is small
        # im2col: concat the K shifted time-windows along channels -> one MXU dot.
        cols = [a_pad[:, k:k + T, :] for k in range(KERNEL_SIZE)]
        lhs = jnp.concatenate(cols, axis=-1).reshape(B_blk * T, KERNEL_SIZE * C)
        out = jnp.dot(lhs.astype(w_ref.dtype), w_ref[l],
                      preferred_element_type=jnp.float32)
        out = out + b_ref[l]  # (1, C) broadcast, f32 epilogue (v5e-safe)
        a_pad[:, PAD:PAD + T, :] = out.reshape(B_blk, T, C)

    # Finalize: sum over time, lane-dense (C is a multiple of 128) store.
    o_ref[0] = jnp.sum(a_pad[:, PAD:PAD + T, :], axis=1).astype(o_ref.dtype)


def cnn_forward(x, weights, biases, *, hidden_size,
                compute_dtype=jnp.float32, target_rows=512):
    """Fused CNNLayer forward.

    x        : [B, T, input_size]
    weights  : list of [C_out, C_in, K]  (PyTorch Conv1d layout)
    biases   : list of [C_out]
    returns  : [B, hidden_size]
    """
    B, T, c_in = x.shape
    L = len(weights)
    K = KERNEL_SIZE
    C = _round_up(max(hidden_size, c_in), LANE)  # lane-dense channel width

    # --- pack weights: [C_out, C_in, K] -> tap-major, zero-pad channels, im2col reshape
    w_stack, b_stack = [], []
    for (w, b) in zip(weights, biases):
        c_out_l, c_in_l, _ = w.shape
        wt = jnp.transpose(w, (2, 1, 0))                              # [K, C_in, C_out]
        wt = jnp.pad(wt, ((0, 0), (0, C - c_in_l), (0, C - c_out_l)))  # zero-padded
        w_stack.append(wt.reshape(K * C, C))
        b_stack.append(jnp.pad(b, (0, C - c_out_l)).reshape(1, C))
    w_all = jnp.stack(w_stack).astype(compute_dtype)   # (L, K*C, C)
    b_all = jnp.stack(b_stack).astype(jnp.float32)     # (L, 1, C)

    # --- batch-block size: aim for >=target_rows MXU rows per grid step, but keep
    #     >=2 grid steps when the batch allows (v7x megacore gets both TCs busy).
    b_blk = max(1, min(B, target_rows // max(T, 1)))
    if B >= 2 and b_blk >= B:
        b_blk = (B + 1) // 2
    nb = -(-B // b_blk)
    B_pad = nb * b_blk

    # One-time boundary pad (batch to a block multiple, channels to lane width).
    x_p = jnp.pad(x, ((0, B_pad - B), (0, 0), (0, C - c_in)))

    out = pl.pallas_call(
        functools.partial(_cnn_fused_kernel, num_layers=L),
        out_shape=jax.ShapeDtypeStruct((nb, b_blk, C), x.dtype),
        grid_spec=pltpu.PrefetchScalarGridSpec(
            num_scalar_prefetch=0,
            grid=(nb,),
            in_specs=[
                pl.BlockSpec((b_blk, T, C), lambda i: (i, 0, 0)),
                pl.BlockSpec((L, K * C, C), lambda i: (0, 0, 0)),
                pl.BlockSpec((L, 1, C), lambda i: (0, 0, 0)),
            ],
            out_specs=pl.BlockSpec((1, b_blk, C), lambda i: (i, 0, 0)),
            scratch_shapes=[pltpu.VMEM((b_blk, T + 2 * PAD, C), jnp.float32)],
        ),
        compiler_params=pltpu.CompilerParams(
            dimension_semantics=("parallel",),
        ),
    )(x_p, w_all, b_all)

    return out.reshape(B_pad, C)[:B, :hidden_size]


class CNNLayerPallas:
    """JAX/Pallas equivalent of pyhealth CNNLayer (inference forward)."""

    def __init__(self, input_size, hidden_size, num_layers=1, dropout=0.5, key=None):
        self.input_size = input_size
        self.hidden_size = hidden_size
        self.num_layers = num_layers
        if key is None:
            key = jax.random.PRNGKey(42)

        def init_conv(key, c_in, c_out, k):
            # PyTorch Conv1d default init: U(-bound, bound), bound = 1/sqrt(c_in*k)
            kw, kb = jax.random.split(key)
            bound = 1.0 / jnp.sqrt(c_in * k)
            w = jax.random.uniform(kw, (c_out, c_in, k), jnp.float32, -bound, bound)
            b = jax.random.uniform(kb, (c_out,), jnp.float32, -bound, bound)
            return w, b

        keys = jax.random.split(key, num_layers)
        self.params = [init_conv(keys[0], input_size, hidden_size, KERNEL_SIZE)]
        for i in range(num_layers - 1):
            self.params.append(
                init_conv(keys[i + 1], hidden_size, hidden_size, KERNEL_SIZE)
            )

    def __call__(self, x, mask=None, compute_dtype=jnp.float32):
        # x: [B, T, input_size]; mask accepted but unused (as in the reference).
        # Dropout: eval-mode identity.
        weights = [w for (w, _) in self.params]
        biases = [b for (_, b) in self.params]
        return cnn_forward(x, weights, biases,
                           hidden_size=self.hidden_size,
                           compute_dtype=compute_dtype)


def _reference_forward(model, x):
    """Pure-JAX reference (same math) for correctness checks."""
    h = x
    for (w, b) in model.params:
        c_out, c_in, K = w.shape
        wt = jnp.transpose(w, (2, 1, 0))  # [K, C_in, C_out]
        hp = jnp.pad(h, ((0, 0), (PAD, PAD), (0, 0)))
        T = h.shape[1]
        acc = jnp.broadcast_to(b, (h.shape[0], T, c_out)).astype(jnp.float32)
        for k in range(K):
            acc = acc + jnp.einsum("bti,io->bto", hp[:, k:k + T, :], wt[k])
        h = acc.astype(x.dtype)
    return jnp.sum(h, axis=1)


if __name__ == "__main__":
    key = jax.random.PRNGKey(0)

    # --- small test (matches the module's tiny-shape usage) ---
    B, T, INPUT_SIZE, HIDDEN, NUM_LAYERS = 2, 8, 5, 32, 2
    kx, kp, kx2, kp2 = jax.random.split(key, 4)
    x = jax.random.normal(kx, (B, T, INPUT_SIZE), dtype=jnp.float32)
    model = CNNLayerPallas(INPUT_SIZE, HIDDEN, num_layers=NUM_LAYERS, dropout=0.5, key=kp)

    out = jax.block_until_ready(model(x, mask=None))
    assert out.shape == (B, HIDDEN), out.shape
    ref = jax.block_until_ready(_reference_forward(model, x))
    assert jnp.allclose(out, ref, atol=1e-4, rtol=1e-4), float(jnp.max(jnp.abs(out - ref)))

    # bf16 MXU-input path (v6e/v7x feedback): f32 accumulation, looser tolerance.
    out_bf16 = jax.block_until_ready(model(x, mask=None, compute_dtype=jnp.bfloat16))
    assert jnp.allclose(out_bf16, ref, atol=2e-1, rtol=1e-1), float(
        jnp.max(jnp.abs(out_bf16 - ref)))

    # --- docstring-sized test (B=3, T=128, hidden=64): exercises batch blocking/padding ---
    B2, T2, IN2, H2, L2 = 3, 128, 5, 64, 2
    x2 = jax.random.normal(kx2, (B2, T2, IN2), dtype=jnp.float32)
    model2 = CNNLayerPallas(IN2, H2, num_layers=L2, dropout=0.5, key=kp2)
    out2 = jax.block_until_ready(model2(x2, mask=None))
    assert out2.shape == (B2, H2), out2.shape
    ref2 = jax.block_until_ready(_reference_forward(model2, x2))
    assert jnp.allclose(out2, ref2, atol=1e-3, rtol=1e-3), float(
        jnp.max(jnp.abs(out2 - ref2)))

    print("KERNEL_OK")
</pallas_src>

<mosaic_0001>
module attributes {stable_mosaic.version = 11 : i64} {
  func.func @_cnn_fused_kernel(%arg0: i32, %arg1: memref<1x8x128xf32, #tpu.memory_space<vmem>>, %arg2: memref<2x640x128xf32, #tpu.memory_space<vmem>>, %arg3: memref<2x1x128xf32, #tpu.memory_space<vmem>>, %arg4: memref<1x1x128xf32, #tpu.memory_space<vmem>>, %arg5: memref<1x12x128xf32, #tpu.memory_space<vmem>>) attributes {dimension_semantics = [#tpu.dimension_semantics<parallel>], iteration_bounds = array<i64: 2>, scalar_prefetch = 0 : i64, scratch_operands = 1 : i64, tpu.core_type = #tpu.core_type<tc>, window_params = [{transform_indices = @transform_0, window_bounds = array<i64: 1, 8, 128>}, {pipeline_mode = #tpu.pipeline_mode<synchronous>, transform_indices = @transform_1, window_bounds = array<i64: 2, 640, 128>}, {pipeline_mode = #tpu.pipeline_mode<synchronous>, transform_indices = @transform_2, window_bounds = array<i64: 2, 1, 128>}, {transform_indices = @transform_3, window_bounds = array<i64: 1, 1, 128>}]} {
    %cst = arith.constant 0.000000e+00 : f32
    %0 = vector.broadcast %cst : f32 to vector<1x12x128xf32>
    %c0 = arith.constant 0 : index
    %c0_0 = arith.constant 0 : index
    %c0_1 = arith.constant 0 : index
    %1 = vector.load %arg5[%c0, %c0_0, %c0_1] : memref<1x12x128xf32, #tpu.memory_space<vmem>>, vector<1x12x128xf32>
    tpu.vector_store %arg5[%c0, %c0_0, %c0_1], %0 {strides = array<i32>} : memref<1x12x128xf32, #tpu.memory_space<vmem>>, vector<1x12x128xf32>,
    %c0_2 = arith.constant 0 : index
    %c0_3 = arith.constant 0 : index
    %c0_4 = arith.constant 0 : index
    %2 = vector.load %arg1[%c0_2, %c0_3, %c0_4] : memref<1x8x128xf32, #tpu.memory_space<vmem>>, vector<1x8x128xf32>
    %c0_5 = arith.constant 0 : index
    %c2 = arith.constant 2 : index
    %c0_6 = arith.constant 0 : index
    %3 = vector.load %arg5[%c0_5, %c2, %c0_6] : memref<1x12x128xf32, #tpu.memory_space<vmem>>, vector<1x8x128xf32>
    tpu.vector_store %arg5[%c0_5, %c2, %c0_6], %2 {strides = array<i32>} : memref<1x12x128xf32, #tpu.memory_space<vmem>>, vector<1x8x128xf32>,
    %c0_7 = arith.constant 0 : index
    %c0_8 = arith.constant 0 : index
    %c0_9 = arith.constant 0 : index
    %4 = vector.load %arg5[%c0_7, %c0_8, %c0_9] : memref<1x12x128xf32, #tpu.memory_space<vmem>>, vector<1x8x128xf32>
    %c0_10 = arith.constant 0 : index
    %c1 = arith.constant 1 : index
    %c0_11 = arith.constant 0 : index
    %5 = vector.load %arg5[%c0_10, %c1, %c0_11] : memref<1x12x128xf32, #tpu.memory_space<vmem>>, vector<1x8x128xf32>
    %c0_12 = arith.constant 0 : index
    %c2_13 = arith.constant 2 : index
    %c0_14 = arith.constant 0 : index
    %6 = vector.load %arg5[%c0_12, %c2_13, %c0_14] : memref<1x12x128xf32, #tpu.memory_space<vmem>>, vector<1x8x128xf32>
    %c0_15 = arith.constant 0 : index
    %c3 = arith.constant 3 : index
    %c0_16 = arith.constant 0 : index
    %7 = vector.load %arg5[%c0_15, %c3, %c0_16] : memref<1x12x128xf32, #tpu.memory_space<vmem>>, vector<1x8x128xf32>
    %c0_17 = arith.constant 0 : index
    %c4 = arith.constant 4 : index
    %c0_18 = arith.constant 0 : index
    %8 = vector.load %arg5[%c0_17, %c4, %c0_18] : memref<1x12x128xf32, #tpu.memory_space<vmem>>, vector<1x8x128xf32>
    %9 = tpu.concatenate %4, %5, %6, %7, %8 in 2 : vector<1x8x128xf32>, vector<1x8x128xf32>, vector<1x8x128xf32>, vector<1x8x128xf32>, vector<1x8x128xf32> -> vector<1x8x640xf32>
    %10 = vector.shape_cast %9 : vector<1x8x640xf32> to vector<8x640xf32>
    %c0_19 = arith.constant 0 : index
    %c0_20 = arith.constant 0 : index
    %c0_21 = arith.constant 0 : index
    %11 = vector.load %arg2[%c0_19, %c0_20, %c0_21] : memref<2x640x128xf32, #tpu.memory_space<vmem>>, vector<1x640x128xf32>
    %12 = vector.shape_cast %11 : vector<1x640x128xf32> to vector<640x128xf32>
    %cst_22 = arith.constant dense<0.000000e+00> : vector<8x128xf32>
    %13 = tpu.matmul %10, %12, %cst_22 {dimension_numbers = #tpu.dot_dimension_numbers<[1], [0], [0], [1], [0, 0, 1, 1], [], []>} : vector<8x640xf32>, vector<640x128xf32>, vector<8x128xf32> -> vector<8x128xf32>
    %c0_23 = arith.constant 0 : index
    %c0_24 = arith.constant 0 : index
    %c0_25 = arith.constant 0 : index
    %14 = vector.load %arg3[%c0_23, %c0_24, %c0_25] : memref<2x1x128xf32, #tpu.memory_space<vmem>>, vector<1x1x128xf32>
    %15 = vector.shape_cast %14 : vector<1x1x128xf32> to vector<1x128xf32>
    %16 = vector.broadcast %15 : vector<1x128xf32> to vector<8x128xf32>
    %17 = arith.addf %13, %16 : vector<8x128xf32>
    %18 = vector.shape_cast %17 : vector<8x128xf32> to vector<1x8x128xf32>
    %c0_26 = arith.constant 0 : index
    %c2_27 = arith.constant 2 : index
    %c0_28 = arith.constant 0 : index
    %19 = vector.load %arg5[%c0_26, %c2_27, %c0_28] : memref<1x12x128xf32, #tpu.memory_space<vmem>>, vector<1x8x128xf32>
    tpu.vector_store %arg5[%c0_26, %c2_27, %c0_28], %18 {strides = array<i32>} : memref<1x12x128xf32, #tpu.memory_space<vmem>>, vector<1x8x128xf32>,
    %c0_29 = arith.constant 0 : index
    %c0_30 = arith.constant 0 : index
    %c0_31 = arith.constant 0 : index
    %20 = vector.load %arg5[%c0_29, %c0_30, %c0_31] : memref<1x12x128xf32, #tpu.memory_space<vmem>>, vector<1x8x128xf32>
    %c0_32 = arith.constant 0 : index
    %c1_33 = arith.constant 1 : index
    %c0_34 = arith.constant 0 : index
    %21 = vector.load %arg5[%c0_32, %c1_33, %c0_34] : memref<1x12x128xf32, #tpu.memory_space<vmem>>, vector<1x8x128xf32>
    %c0_35 = arith.constant 0 : index
    %c2_36 = arith.constant 2 : index
    %c0_37 = arith.constant 0 : index
    %22 = vector.load %arg5[%c0_35, %c2_36, %c0_37] : memref<1x12x128xf32, #tpu.memory_space<vmem>>, vector<1x8x128xf32>
    %c0_38 = arith.constant 0 : index
    %c3_39 = arith.constant 3 : index
    %c0_40 = arith.constant 0 : index
    %23 = vector.load %arg5[%c0_38, %c3_39, %c0_40] : memref<1x12x128xf32, #tpu.memory_space<vmem>>, vector<1x8x128xf32>
    %c0_41 = arith.constant 0 : index
    %c4_42 = arith.constant 4 : index
    %c0_43 = arith.constant 0 : index
    %24 = vector.load %arg5[%c0_41, %c4_42, %c0_43] : memref<1x12x128xf32, #tpu.memory_space<vmem>>, vector<1x8x128xf32>
    %25 = tpu.concatenate %20, %21, %22, %23, %24 in 2 : vector<1x8x128xf32>, vector<1x8x128xf32>, vector<1x8x128xf32>, vector<1x8x128xf32>, vector<1x8x128xf32> -> vector<1x8x640xf32>
    %26 = vector.shape_cast %25 : vector<1x8x640xf32> to vector<8x640xf32>
    %c1_44 = arith.constant 1 : index
    %c0_45 = arith.constant 0 : index
    %c0_46 = arith.constant 0 : index
    %27 = vector.load %arg2[%c1_44, %c0_45, %c0_46] : memref<2x640x128xf32, #tpu.memory_space<vmem>>, vector<1x640x128xf32>
    %28 = vector.shape_cast %27 : vector<1x640x128xf32> to vector<640x128xf32>
    %cst_47 = arith.constant dense<0.000000e+00> : vector<8x128xf32>
    %29 = tpu.matmul %26, %28, %cst_47 {dimension_numbers = #tpu.dot_dimension_numbers<[1], [0], [0], [1], [0, 0, 1, 1], [], []>} : vector<8x640xf32>, vector<640x128xf32>, vector<8x128xf32> -> vector<8x128xf32>
    %c1_48 = arith.constant 1 : index
    %c0_49 = arith.constant 0 : index
    %c0_50 = arith.constant 0 : index
    %30 = vector.load %arg3[%c1_48, %c0_49, %c0_50] : memref<2x1x128xf32, #tpu.memory_space<vmem>>, vector<1x1x128xf32>
    %31 = vector.shape_cast %30 : vector<1x1x128xf32> to vector<1x128xf32>
    %32 = vector.broadcast %31 : vector<1x128xf32> to vector<8x128xf32>
    %33 = arith.addf %29, %32 : vector<8x128xf32>
    %34 = vector.shape_cast %33 : vector<8x128xf32> to vector<1x8x128xf32>
    %c0_51 = arith.constant 0 : index
    %c2_52 = arith.constant 2 : index
    %c0_53 = arith.constant 0 : index
    %35 = vector.load %arg5[%c0_51, %c2_52, %c0_53] : memref<1x12x128xf32, #tpu.memory_space<vmem>>, vector<1x8x128xf32>
    tpu.vector_store %arg5[%c0_51, %c2_52, %c0_53], %34 {strides = array<i32>} : memref<1x12x128xf32, #tpu.memory_space<vmem>>, vector<1x8x128xf32>,
    %c0_54 = arith.constant 0 : index
    %c2_55 = arith.constant 2 : index
    %c0_56 = arith.constant 0 : index
    %36 = vector.load %arg5[%c0_54, %c2_55, %c0_56] : memref<1x12x128xf32, #tpu.memory_space<vmem>>, vector<1x8x128xf32>
    %cst_57 = arith.constant dense<0.000000e+00> : vector<1x128xf32>
    %37 = vector.multi_reduction <add>, %36, %cst_57 [1] : vector<1x8x128xf32> to vector<1x128xf32>
    %c0_58 = arith.constant 0 : index
    %c0_59 = arith.constant 0 : index
    %c0_60 = arith.constant 0 : index
    %38 = vector.load %arg4[%c0_58, %c0_59, %c0_60] : memref<1x1x128xf32, #tpu.memory_space<vmem>>, vector<1x1x128xf32>
    %39 = vector.shape_cast %38 : vector<1x1x128xf32> to vector<1x128xf32>
    %40 = vector.shape_cast %37 : vector<1x128xf32> to vector<1x1x128xf32>
    tpu.vector_store %arg4[%c0_58, %c0_59, %c0_60], %40 {strides = array<i32>} : memref<1x1x128xf32, #tpu.memory_space<vmem>>, vector<1x1x128xf32>,
    return
  }
  func.func @transform_0(%arg0: i32) -> (i32, i32, i32) {
    %c0_i32 = arith.constant 0 : i32
    %c0_i32_0 = arith.constant 0 : i32
    %c0_i32_1 = arith.constant 0 : i32
    return %arg0, %c0_i32, %c0_i32_0 : i32, i32, i32
  }
  func.func @transform_1(%arg0: i32) -> (i32, i32, i32) {
    %c0_i32 = arith.constant 0 : i32
    %c0_i32_0 = arith.constant 0 : i32
    %c0_i32_1 = arith.constant 0 : i32
    %c0_i32_2 = arith.constant 0 : i32
    return %c0_i32, %c0_i32_0, %c0_i32_1 : i32, i32, i32
  }
  func.func @transform_2(%arg0: i32) -> (i32, i32, i32) {
    %c0_i32 = arith.constant 0 : i32
    %c0_i32_0 = arith.constant 0 : i32
    %c0_i32_1 = arith.constant 0 : i32
    %c0_i32_2 = arith.constant 0 : i32
    return %c0_i32, %c0_i32_0, %c0_i32_1 : i32, i32, i32
  }
  func.func @transform_3(%arg0: i32) -> (i32, i32, i32) {
    %c0_i32 = arith.constant 0 : i32
    %c0_i32_0 = arith.constant 0 : i32
    %c0_i32_1 = arith.constant 0 : i32
    return %arg0, %c0_i32, %c0_i32_0 : i32, i32, i32
  }
}

</mosaic_0001>

<bundles_post_ra>
// kernel: tpu_custom_call.1
= control target key start
LH: loop header
LB: loop body
LE: loop exit
PB: predicated region body
PF: predicated region fallthrough
CT: control target
= control target key end

     0   :  { %8 = vsyncpa [#allocation4], 0  ;;  %s1792_s0 = inlined_call_operand.hbm [shape: f32[2,8,128], index: 0, kind: input, shape index: {}]   ;;  %s1793_s1 = inlined_call_operand.hbm [shape: f32[2,640,128], index: 1, kind: input, shape index: {}]   ;;  %s1794_s2 = inlined_call_operand.vmem [shape: f32[2,1,128], index: 2, kind: input, shape index: {}]   ;;  %s1795_s3 = inlined_call_operand.hbm [shape: f32[2,1,128], index: 3, kind: output, shape index: {}]  }
   0x1   :  { %10 = vsyncpa [#allocation4 + $0x1], 0 }
   0x2   :  { %11 = vsyncpa [#allocation7], 0 }
   0x3   :  { %12 = vsyncpa [#allocation5], 0 }
   0x4   :  { %14 = vsyncpa [#allocation5 + $0x1], 0  ;;  %s1564_s12 = smov 0   ;;  %s1566_s13 = smov 0  }
   0x5   :  { %s1568_s14 = smov 0   ;;  %s1570_s15 = smov 0  }
   0x6 LB: > { %s1585_s16 = sadd.s32 4294967295, %s1534_s15   ;;  %s909_s17 = sadd.s32 4294967294, %s1534_s15   ;;  %s1534_s15 = sphi %s1570_s15, %s1815_s15   ;;  %s1530_s14 = sphi %s1568_s14, %s1814_s14   ;;  %s1526_s13 = sphi %s1566_s13, %s1813_s13   ;;  %s1522_s12 = sphi %s1564_s12, %s1812_s12  }
   0x7   : > { %p40_p0 = scmp.ne.s32.totalorder %s1526_s13, %s1522_s12  ;;  %p1796_p1 = scmp.eq.s32.totalorder %s1585_s16, 0 }
   0x8   : > { %p112_p3 = scmp.eq.s32.totalorder %s909_s17, 1  ;;  %p910_p5 = scmp.ge.s32.totalorder %s1534_s15, 1 }
   0x9   : > { %p1594_p4 = por %p1796_p1, %p40_p0  ;;  %p119_p7 = scmp.lt.s32.totalorder %s1534_s15, 3 }
   0xa   : > { %p1599_p6 = por %p112_p3, %p40_p0  ;;  %s1536_s21 = smov [#allocation6]  }
   0xb   : > { %s1799_s18 = scalar_select %p1594_p4, 1, 0 }
   0xc   : > { %s1800_s19 = scalar_select %p1599_p6, 1, 0 }
   0xd   : > { %p1604_p8 = pnand %p910_p5, %p119_p7  ;;  %s131_s22 = sshll.u32 %s1536_s21, 4  ;;  %s1608_s22 = int_to_ptr.vmem [resolvable:$true] %s131_s22 }
   0xe   : > { %s1620_s24 = sadd.s32 1, %s1534_s15   ;;  %s27_s25 = sadd.s32 1, %s1530_s14 }
   0xf   : > { %s1801_s20 = scalar_select %p1604_p8, 1, 0 }
  0x10   : > { %p1352_p9 = pneg %p1604_p8  ;;  %s24_s26 = ssub.s32 %s1534_s15, %s1620_s24 }
  0x11   : > { %s1406_s29 = scalar_lea.hbm %s1793_s1, 20480 }
  0x12   : > { %p1615_p11 = pnand %p1352_p9, %p1796_p1  ;;  %p1407_p12 = scmp.ne.s32.totalorder %s1793_s1, %s1406_s29 }
  0x13   : > { %p1413_p5 = scmp.lt.u32.totalorder %s1406_s29, %s1793_s1 }
  0x14   : > { %p1408_p13 = pneg %p1615_p11 }
  0x16   : > { %p1409_p0 = pnand %p1408_p13, %p1407_p12 }
  0x18   : > { %p1410_p3 = pneg %p1409_p0 }
  0x1a   : > { %p1415_p7 = pnand %p1413_p5, %p1410_p3 }
  0x1c   : > { %1418 = shalt.err (!%p1415_p7)
}
  0x1d   : > { %s1419_s7 = scalar_lea.vmem %s1608_s22, 20480  ;;  %p1427_p2 = scmp.lt.s32.totalorder %s1608_s22, %s1608_s22 }
  0x1e   : > { %p1420_p9 = scmp.ne.s32.totalorder %s1608_s22, %s1419_s7  ;;  %p1428_p6 = scmp.lt.s32.totalorder %s1419_s7, %s1419_s7 }
  0x20   : > { %p1422_p10 = pnand %p1420_p9, %p1408_p13  ;;  %p1429_p4 = por %p1428_p6, %p1427_p2 }
  0x22   : > { %p1423_p1 = pneg %p1422_p10 }
  0x24   : > { %p1430_p8 = pnand %p1429_p4, %p1423_p1 }
  0x26   : > { %1433 = shalt.err (!%p1430_p8)
}
  0x27   : > { %s1537_s8 = smov 128   ;;  %s1538_s9 = smov 8  }
  0x28   : > { %1355 = dma.hbm_to_vmem [thread:$0]  (!%p1615_p11), %s1793_s1, 20480, %s1608_s22, [#allocation7], %s1537_s8, %s1537_s8, %s1538_s9  }
  0x29   : > { %p25_p2 = scmp.eq.s32.totalorder %s24_s26, 0  ;;  %p34_p1 = scmp.ne.s32.totalorder %s1530_s14, %s1526_s13 }
  0x2a   : > { %p35_p4 = scmp.eq.s32.totalorder %s1534_s15, 0  ;;  %p1365_p6 = scmp.lt.s32.totalorder %s1534_s15, 2 }
  0x2b   : > { %s1651_s17 = scalar_select %p25_p2, %s1530_s14, %s27_s25  }
  0x2c   : > { %p36_p8 = por %p35_p4, %p34_p1  ;;  %p1803_p10 = scmp.eq.s32.totalorder %s1585_s16, 1 }
  0x2d   : > { %s148_s27 = sand.u32 1, %s1530_s14   ;;  %s914_s28 = sshll.u32 %s1534_s15, 7 }
  0x2e   : > { %p1655_p12 = por %p1803_p10, %p34_p1  ;;  %s913_s29 = sshll.u32 %s148_s27, 3 }
  0x2f   : > { %s1664_s4 = scalar_lea.hbm %s1792_s0, %s914_s28  ;;  %s152_s22 = scalar_lea.vmem [#allocation3], %s913_s29 }
  0x30   : > { %s159_s25 = sshll.u32 %s152_s22, 4  ;;  %p1666_p11 = pnand %p1365_p6, %p36_p8  ;;  %s1670_s25 = int_to_ptr.vmem [resolvable:$true] %s159_s25 }
  0x31   : > { %s149_s5 = scalar_lea.sflag [#allocation4], %s148_s27  ;;  %s1434_s6 = scalar_lea.hbm %s1664_s4, 128 }
  0x32   : > { %p1435_p13 = scmp.ne.s32.totalorder %s1664_s4, %s1434_s6  ;;  %p1436_p0 = pneg %p1666_p11 }
  0x33   : > { %s1439_s9 = scalar_lea.hbm %s1792_s0, 256  ;;  %p1440_p7 = scmp.lt.u32.totalorder %s1664_s4, %s1792_s0 }
  0x34   : > { %p1437_p3 = pnand %p1436_p0, %p1435_p13  ;;  %p1441_p9 = scmp.lt.u32.totalorder %s1439_s9, %s1434_s6 }
  0x35   : > { %p1443_p1 = scmp.lt.u32.totalorder %s1434_s6, %s1664_s4 }
  0x36   : > { %p1438_p5 = pneg %p1437_p3  ;;  %p1442_p2 = por %p1441_p9, %p1440_p7 }
  0x38   : > { %p1444_p4 = por %p1443_p1, %p1442_p2 }
  0x3a   : > { %p1445_p6 = pnand %p1444_p4, %p1438_p5 }
  0x3c   : > { %1448 = shalt.err (!%p1445_p6)
}
  0x3d   : > { %s1449_s27 = scalar_lea.vmem %s1670_s25, 128  ;;  %s1539_s28 = smov [#allocation3]  }
  0x3e   : > { %p1450_p8 = scmp.ne.s32.totalorder %s1670_s25, %s1449_s27  ;;  %s1454_s29 = sshll.u32 %s1539_s28, 4  ;;  %s1455_s29 = int_to_ptr.vmem [resolvable:$false] %s1454_s29 }
  0x3f   : > { %s1456_s23 = scalar_lea.vmem %s1455_s29, 256  ;;  %p1457_p3 = scmp.lt.s32.totalorder %s1670_s25, %s1455_s29 }
  0x40   : > { %p1452_p10 = pnand %p1450_p8, %p1436_p0  ;;  %p1458_p7 = scmp.lt.s32.totalorder %s1456_s23, %s1449_s27 }
  0x42   : > { %p1453_p13 = pneg %p1452_p10  ;;  %p1459_p9 = por %p1458_p7, %p1457_p3 }
  0x44   : > { %p1460_p2 = pnand %p1459_p9, %p1453_p13 }
  0x46   : > { %1463 = shalt.err (!%p1460_p2)
}
  0x47   : > { %1359 = dma.hbm_to_vmem [thread:$0]  (!%p1666_p11), %s1664_s4, 128, %s1670_s25, %s149_s5  }
  0x48   : > { %p1806_p5 = scmp.ne.s32.totalorder %s1801_s20, 0 }
  0x49   : > { %s1700_s30 = sand.u32 (!%p1806_p5), 1, %s1526_s13   ;;  %p1807_p0 = scmp.ne.s32.totalorder (!%p1806_p5), %s1799_s18, 0 }
  0x4a   : > { %168 = sbr.rel (%p1806_p5) target bundleno = 648 (0x288), region = 32  ;;  %s916_s22 = sshll.u32 (!%p1806_p5), %s1700_s30, 3 }
  0x4b   : > { %s171_s6 = scalar_lea.sflag (!%p1806_p5), [#allocation4], %s1700_s30  ;;  %s1704_s7 = scalar_lea.vmem (!%p1806_p5), [#allocation3], %s916_s22 }
  0x51   : > { %1509 = dma.done.wait (%p1807_p0), %s171_s6, 128  }
  0x52   : > { %1511 = vsyncadd (%p1807_p0), %s171_s6, 4294967168  ;;  %p1808_p11 = scmp.eq.s32.totalorder %s1585_s16, 0 }
  0x54   : > { %1513 = dma.done.wait (%p1808_p11), [#allocation7], 20480   ;;  %p1809_p1 = pmov %p1808_p11 }
  0x55   : > { %v1540_v0 = vmov 0.0   ;;  %v225_v1 = vld [vmem:[#allocation6 + $0x80] sm:$0xff]  ;;  %v226_v2 = vld [vmem:[#allocation6 + $0x88] sm:$0xff]  ;;  %v227_v12 = vld [vmem:[#allocation6 + $0x90] sm:$0xff]  ;;  %vm1542_vm0 = vmmov 0   ;;  %s921_s26 = sshll.u32 %s1585_s16, 4 }
  0x56   : > { %1515 = vsyncadd (%p1809_p1), [#allocation7], 4294946816  ;;  %200 = vst [vmem:[#allocation2] sm:$0xff] %v1540_v0  ;;  %v209_v3 = vld [vmem:[#allocation6] sm:$0xff]  ;;  %v1168_v4 = vpack.c.bf16 %v226_v2, %v225_v1  ;;  %v210_v5 = vld [vmem:[#allocation6 + $0x8] sm:$0xff]  ;;  %s199_s5 = scalar_lea.vmem [#allocation8], %s1700_s30  ;;  %s1748_s11 = scalar_lea.hbm %s1795_s3, %s921_s26 }
  0x57   : > { %201 = vst [vmem:[#allocation2 + $0x8] sm:$0xf] %v1540_v0  ;;  %v257_v6 = vld [vmem:[#allocation6 + $0x180] sm:$0xff]  ;;  %v258_v7 = vld [vmem:[#allocation6 + $0x188] sm:$0xff]  ;;  %v1170_v8 = vpack.c.bf16 %v210_v5, %v209_v3  ;;  %v228_v14 = vld [vmem:[#allocation6 + $0x98] sm:$0xff]  ;;  %s833_s8 = sshll.u32 %s199_s5, 4  ;;  %s1750_s8 = int_to_ptr.vmem [resolvable:$true] %s833_s8 }
  0x58   : > { %v1200_v9 = vpack.c.bf16 %v258_v7, %v257_v6  ;;  %v241_v10 = vld [vmem:[#allocation6 + $0x100] sm:$0xff]  ;;  %v242_v11 = vld [vmem:[#allocation6 + $0x108] sm:$0xff]  ;;  %1169 = vmatprep.subr.bf16.mxu0 %v1168_v4  ;;  %v211_v15 = vld [vmem:[#allocation6 + $0x10] sm:$0xff]  ;;  %v1172_v17 = vpack.c.bf16 %v228_v14, %v227_v12  ;;  %s821_s27 = scalar_lea.sflag [#allocation5], %s1700_s30  ;;  %s1464_s28 = scalar_lea.vmem %s1750_s8, 16 }
  0x59   : > { %v1202_v13 = vpack.c.bf16 %v242_v11, %v241_v10  ;;  %v212_v16 = vld [vmem:[#allocation6 + $0x18] sm:$0xff]  ;;  %1171 = vmatpush3.bf16.msra.mxu0 %v1170_v8  ;;  %v259_v19 = vld [vmem:[#allocation6 + $0x190] sm:$0xff]  ;;  %v229_v24 = vld [vmem:[#allocation6 + $0xa0] sm:$0xff]  ;;  %p1465_p4 = scmp.ne.s32.totalorder %s1750_s8, %s1464_s28  ;;  %s1543_s16 = smov [#allocation8]  }
  0x5a   : > { %1201 = vmatprep.subr.bf16.mxu1 %v1200_v9  ;;  %v1174_v18 = vpack.c.bf16 %v212_v16, %v211_v15  ;;  %v260_v20 = vld [vmem:[#allocation6 + $0x198] sm:$0xff]  ;;  %v243_v21 = vld [vmem:[#allocation6 + $0x110] sm:$0xff]  ;;  %v230_v25 = vld [vmem:[#allocation6 + $0xa8] sm:$0xff]  ;;  %1173 = vmatprep.subr.bf16.mxu0 %v1172_v17  ;;  %s1468_s29 = sshll.u32 %s1543_s16, 4  ;;  %s1469_s29 = int_to_ptr.vmem [resolvable:$false] %s1468_s29 }
  0x5b   : > { %1203 = vmatpush3.bf16.msra.mxu1 %v1202_v13  ;;  %v1204_v22 = vpack.c.bf16 %v260_v20, %v259_v19  ;;  %v244_v23 = vld [vmem:[#allocation6 + $0x118] sm:$0xff]  ;;  %v1176_v27 = vpack.c.bf16 %v230_v25, %v229_v24  ;;  %v213_v28 = vld [vmem:[#allocation6 + $0x20] sm:$0xff]  ;;  %v214_v29 = vld [vmem:[#allocation6 + $0x28] sm:$0xff]  ;;  %p1466_p6 = pnand %p1465_p4, %p1655_p12  ;;  %s1470_s23 = scalar_lea.vmem %s1469_s29, 32 }
  0x5c   : > { %v1206_v26 = vpack.c.bf16 %v244_v23, %v243_v21  ;;  %v261_v30 = vld [vmem:[#allocation6 + $0x1a0] sm:$0xff]  ;;  %v262_v31 = vld [vmem:[#allocation6 + $0x1a8] sm:$0xff]  ;;  %v1178_v34 = vpack.c.bf16 %v214_v29, %v213_v28  ;;  %v231_v36 = vld [vmem:[#allocation6 + $0xb0] sm:$0xff]  ;;  %p1471_p10 = scmp.lt.s32.totalorder %s1750_s8, %s1469_s29  ;;  %p1472_p13 = scmp.lt.s32.totalorder %s1470_s23, %s1464_s28 }
  0x5d   : > { %1205 = vmatprep.subr.bf16.mxu1 %v1204_v22  ;;  %v245_v32 = vld [vmem:[#allocation6 + $0x120] sm:$0xff]  ;;  %v246_v33 = vld [vmem:[#allocation6 + $0x128] sm:$0xff]  ;;  %1175 = vmatpush3.bf16.msra.mxu0 %v1174_v18  ;;  %v1208_v35 = vpack.c.bf16 %v262_v31, %v261_v30  ;;  %v232_v37 = vld [vmem:[#allocation6 + $0xb8] sm:$0xff]  ;;  %p1467_p8 = pneg %p1466_p6 }
  0x5e   : > { %v215_v38 = vld [vmem:[#allocation6 + $0x30] sm:$0xff]  ;;  %1177 = vmatprep.subr.bf16.mxu0 %v1176_v27  ;;  %v1210_v39 = vpack.c.bf16 %v246_v33, %v245_v32  ;;  %v1180_v40 = vpack.c.bf16 %v232_v37, %v231_v36  ;;  %v216_v41 = vld [vmem:[#allocation6 + $0x38] sm:$0xff]  ;;  %v233_v47 = vld [vmem:[#allocation6 + $0xc0] sm:$0xff]  ;;  %p1473_p3 = por %p1472_p13, %p1471_p10 }
  0x5f   : > { %1207 = vmatpush3.bf16.msra.mxu1 %v1206_v26  ;;  %v263_v42 = vld [vmem:[#allocation6 + $0x1b0] sm:$0xff]  ;;  %v264_v43 = vld [vmem:[#allocation6 + $0x1b8] sm:$0xff]  ;;  %v234_v48 = vld [vmem:[#allocation6 + $0xc8] sm:$0xff]  ;;  %v1182_v49 = vpack.c.bf16 %v216_v41, %v215_v38  ;;  %v1541_v41 = vmov 0.0|0.0  }
  0x60   : > { %1209 = vmatprep.subr.bf16.mxu1 %v1208_v35  ;;  %v1212_v44 = vpack.c.bf16 %v264_v43, %v263_v42  ;;  %v247_v45 = vld [vmem:[#allocation6 + $0x130] sm:$0xff]  ;;  %v248_v46 = vld [vmem:[#allocation6 + $0x138] sm:$0xff]  ;;  %v265_v50 = vld [vmem:[#allocation6 + $0x1c0] sm:$0xff]  ;;  %v1184_v53 = vpack.c.bf16 %v234_v48, %v233_v47  ;;  %p1474_p7 = pnand %p1473_p3, %p1467_p8 }
  0x61   : > { %1179 = vmatpush3.bf16.msra.mxu0 %v1178_v34  ;;  %v266_v51 = vld [vmem:[#allocation6 + $0x1c8] sm:$0xff]  ;;  %v1214_v52 = vpack.c.bf16 %v248_v46, %v247_v45  ;;  %v217_v54 = vld [vmem:[#allocation6 + $0x40] sm:$0xff]  ;;  %v235_v59 = vld [vmem:[#allocation6 + $0xd0] sm:$0xff] }
  0x62   : > { %1181 = vmatprep.subr.bf16.mxu0 %v1180_v40  ;;  %v218_v55 = vld [vmem:[#allocation6 + $0x48] sm:$0xff]  ;;  %v249_v56 = vld [vmem:[#allocation6 + $0x140] sm:$0xff]  ;;  %v1216_v57 = vpack.c.bf16 %v266_v51, %v265_v50  ;;  %v236_v60 = vld [vmem:[#allocation6 + $0xd8] sm:$0xff] }
  0x63   : > { %1211 = vmatpush3.bf16.msra.mxu1 %v1210_v39  ;;  %v250_v58 = vld [vmem:[#allocation6 + $0x148] sm:$0xff]  ;;  %v267_v61 = vld [vmem:[#allocation6 + $0x1d0] sm:$0xff]  ;;  %v268_v62 = vld [vmem:[#allocation6 + $0x1d8] sm:$0xff]  ;;  %v1186_v63 = vpack.c.bf16 %v218_v55, %v217_v54  ;;  %v1188_v2 = vpack.c.bf16 %v236_v60, %v235_v59 }
  0x64   : > { %1213 = vmatprep.subr.bf16.mxu1 %v1212_v44  ;;  %v1218_v1 = vpack.c.bf16 %v250_v58, %v249_v56  ;;  %v219_v3 = vld [vmem:[#allocation6 + $0x50] sm:$0xff]  ;;  %v220_v4 = vld [vmem:[#allocation6 + $0x58] sm:$0xff]  ;;  %v1220_v6 = vpack.c.bf16 %v268_v62, %v267_v61  ;;  %v237_v8 = vld [vmem:[#allocation6 + $0xe0] sm:$0xff] }
  0x65   : > { %1183 = vmatpush3.bf16.msra.mxu0 %v1182_v49  ;;  %v251_v5 = vld [vmem:[#allocation6 + $0x150] sm:$0xff]  ;;  %v252_v7 = vld [vmem:[#allocation6 + $0x158] sm:$0xff]  ;;  %v238_v9 = vld [vmem:[#allocation6 + $0xe8] sm:$0xff]  ;;  %v1190_v12 = vpack.c.bf16 %v220_v4, %v219_v3 }
  0x66   : > { %1185 = vmatprep.subr.bf16.mxu0 %v1184_v53  ;;  %v269_v10 = vld [vmem:[#allocation6 + $0x1e0] sm:$0xff]  ;;  %v270_v11 = vld [vmem:[#allocation6 + $0x1e8] sm:$0xff]  ;;  %v202_v13 = vld [vmem:[%s1704_s7] sm:$0xff]  ;;  %v1222_v14 = vpack.c.bf16 %v252_v7, %v251_v5  ;;  %v1192_v15 = vpack.c.bf16 %v238_v9, %v237_v8 }
  0x67   : > { %1215 = vmatpush3.bf16.msra.mxu1 %v1214_v52  ;;  %v221_v16 = vld [vmem:[#allocation6 + $0x60] sm:$0xff]  ;;  %v222_v17 = vld [vmem:[#allocation6 + $0x68] sm:$0xff]  ;;  %203 = vst [vmem:[#allocation2 + $0x2] sm:$0xff] %v202_v13  ;;  %v1224_v19 = vpack.c.bf16 %v270_v11, %v269_v10  ;;  %v239_v21 = vld [vmem:[#allocation6 + $0xf0] sm:$0xff] }
  0x68   : > { %1217 = vmatprep.subr.bf16.mxu1 %v1216_v57  ;;  %v253_v18 = vld [vmem:[#allocation6 + $0x160] sm:$0xff]  ;;  %v254_v20 = vld [vmem:[#allocation6 + $0x168] sm:$0xff]  ;;  %v240_v22 = vld [vmem:[#allocation6 + $0xf8] sm:$0xff]  ;;  %v1194_v25 = vpack.c.bf16 %v222_v17, %v221_v16 }
  0x69   : > { %1187 = vmatpush3.bf16.msra.mxu0 %v1186_v63  ;;  %v271_v23 = vld [vmem:[#allocation6 + $0x1f0] sm:$0xff]  ;;  %v272_v24 = vld [vmem:[#allocation6 + $0x1f8] sm:$0xff]  ;;  %v1226_v26 = vpack.c.bf16 %v254_v20, %v253_v18  ;;  %v1196_v27 = vpack.c.bf16 %v240_v22, %v239_v21  ;;  %v273_v37 = vld [vmem:[#allocation6 + $0x200] sm:$0xff] }
  0x6a   : > { %1189 = vmatprep.subr.bf16.mxu0 %v1188_v2  ;;  %v223_v28 = vld [vmem:[#allocation6 + $0x70] sm:$0xff]  ;;  %v224_v29 = vld [vmem:[#allocation6 + $0x78] sm:$0xff]  ;;  %v1228_v30 = vpack.c.bf16 %v272_v24, %v271_v23  ;;  %v274_v38 = vld [vmem:[#allocation6 + $0x208] sm:$0xff] }
  0x6b   : > { %1219 = vmatpush3.bf16.msra.mxu1 %v1218_v1  ;;  %v255_v31 = vld [vmem:[#allocation6 + $0x170] sm:$0xff]  ;;  %v256_v32 = vld [vmem:[#allocation6 + $0x178] sm:$0xff]  ;;  %v1198_v33 = vpack.c.bf16 %v224_v29, %v223_v28  ;;  %v1233_v40 = vpack.c.bf16 %v274_v38, %v273_v37  ;;  %v277_v45 = vld [vmem:[#allocation6 + $0x220] sm:$0xff] }
  0x6c   : > { %1221 = vmatprep.subr.bf16.mxu1 %v1220_v6  ;;  %v1230_v36 = vpack.c.bf16 %v256_v32, %v255_v31  ;;  %v275_v42 = vld [vmem:[#allocation6 + $0x210] sm:$0xff]  ;;  %v276_v43 = vld [vmem:[#allocation6 + $0x218] sm:$0xff]  ;;  %v278_v46 = vld [vmem:[#allocation6 + $0x228] sm:$0xff] }
  0x6d   : > { %1191 = vmatpush3.bf16.msra.mxu0 %v1190_v12  ;;  %v1236_v44 = vpack.c.bf16 %v276_v43, %v275_v42  ;;  %v1239_v47 = vpack.c.bf16 %v278_v46, %v277_v45  ;;  %v279_v48 = vld [vmem:[#allocation6 + $0x230] sm:$0xff]  ;;  %v280_v49 = vld [vmem:[#allocation6 + $0x238] sm:$0xff]  ;;  %v281_v51 = vld [vmem:[#allocation6 + $0x240] sm:$0xff] }
  0x6e   : > { %1193 = vmatprep.subr.bf16.mxu0 %v1192_v15  ;;  %v205_v34 = vld [vmem:[#allocation2 + $0x1] sm:$0xff]  ;;  %v1242_v50 = vpack.c.bf16 %v280_v49, %v279_v48  ;;  %v283_v54 = vld [vmem:[#allocation6 + $0x250] sm:$0xff]  ;;  %v284_v55 = vld [vmem:[#allocation6 + $0x258] sm:$0xff] }
  0x6f   : > { %1223 = vmatpush3.bf16.msra.mxu1 %v1222_v14  ;;  %v207_v35 = vld [vmem:[#allocation2 + $0x3] sm:$0xff]  ;;  %360 = vmatprep.mubr.f32.mxu0 %v205_v34  ;;  %v1248_v56 = vpack.c.bf16 %v284_v55, %v283_v54  ;;  %v287_v60 = vld [vmem:[#allocation6 + $0x270] sm:$0xff]  ;;  %v288_v61 = vld [vmem:[#allocation6 + $0x278] sm:$0xff] }
  0x70   : > { %1225 = vmatprep.subr.bf16.mxu1 %v1224_v19  ;;  %430 = vmatprep.mubr.f32.mxu1 %v207_v35  ;;  %v204_v39 = vld [vmem:[#allocation2] sm:$0xff]  ;;  %v282_v52 = vld [vmem:[#allocation6 + $0x248] sm:$0xff]  ;;  %v1254_v62 = vpack.c.bf16 %v288_v61, %v287_v60  ;;  %v531_v12 = vld [vmem:[#allocation6 + $0x310] sm:$0xff] }
  0x71   : > { %1195 = vmatpush3.bf16.msra.mxu0 %v1194_v25  ;;  %v1245_v53 = vpack.c.bf16 %v282_v52, %v281_v51  ;;  %v285_v57 = vld [vmem:[#allocation6 + $0x260] sm:$0xff]  ;;  %v286_v58 = vld [vmem:[#allocation6 + $0x268] sm:$0xff]  ;;  %v532_v14 = vld [vmem:[#allocation6 + $0x318] sm:$0xff] }
  0x72   : > { %1197 = vmatprep.subr.bf16.mxu0 %v1196_v27  ;;  %v1251_v59 = vpack.c.bf16 %v286_v58, %v285_v57  ;;  %v208_v63 = vld [vmem:[#allocation2 + $0x4] sm:$0xff]  ;;  %v515_v15 = vld [vmem:[#allocation6 + $0x290] sm:$0xff]  ;;  %v516_v16 = vld [vmem:[#allocation6 + $0x298] sm:$0xff]  ;;  %v1260_v17 = vpack.c.bf16 %v532_v14, %v531_v12 }
  0x73   : > { %1227 = vmatpush3.bf16.msra.mxu1 %v1226_v26  ;;  %v529_v1 = vld [vmem:[#allocation6 + $0x300] sm:$0xff]  ;;  %v530_v2 = vld [vmem:[#allocation6 + $0x308] sm:$0xff]  ;;  %v1262_v18 = vpack.c.bf16 %v516_v16, %v515_v15  ;;  %v563_v19 = vld [vmem:[#allocation6 + $0x410] sm:$0xff] }
  0x74   : > { %1229 = vmatprep.subr.bf16.mxu1 %v1228_v30  ;;  %v513_v3 = vld [vmem:[#allocation6 + $0x280] sm:$0xff]  ;;  %v1256_v4 = vpack.c.bf16 %v530_v2, %v529_v1  ;;  %v514_v5 = vld [vmem:[#allocation6 + $0x288] sm:$0xff]  ;;  %v564_v20 = vld [vmem:[#allocation6 + $0x418] sm:$0xff] }
  0x75   : > { %1199 = vmatpush3.bf16.msra.mxu0 %v1198_v33  ;;  %v561_v6 = vld [vmem:[#allocation6 + $0x400] sm:$0xff]  ;;  %v562_v7 = vld [vmem:[#allocation6 + $0x408] sm:$0xff]  ;;  %v1258_v8 = vpack.c.bf16 %v514_v5, %v513_v3  ;;  %v547_v21 = vld [vmem:[#allocation6 + $0x390] sm:$0xff]  ;;  %v1292_v22 = vpack.c.bf16 %v564_v20, %v563_v19 }
  0x76   : > { %1232 = vmatprep.subr.bf16.mxu0 %v1541_v41  ;;  %v1288_v9 = vpack.c.bf16 %v562_v7, %v561_v6  ;;  %v545_v10 = vld [vmem:[#allocation6 + $0x380] sm:$0xff]  ;;  %v546_v11 = vld [vmem:[#allocation6 + $0x388] sm:$0xff]  ;;  %v548_v23 = vld [vmem:[#allocation6 + $0x398] sm:$0xff] }
  0x77   : > { %1231 = vmatpush3.bf16.msra.mxu1 %v1230_v36  ;;  %v533_v24 = vld [vmem:[#allocation6 + $0x320] sm:$0xff]  ;;  %v534_v25 = vld [vmem:[#allocation6 + $0x328] sm:$0xff]  ;;  %v1294_v26 = vpack.c.bf16 %v548_v23, %v547_v21  ;;  %v535_v36 = vld [vmem:[#allocation6 + $0x330] sm:$0xff] }
  0x78   : > { %361 = vmatmul.mubr.f32.vlgmr.msra.gmra.mrb[0].mxu0 %v204_v39  ;;  %1257 = vmatprep.subr.bf16.mxu1 %v1256_v4  ;;  %v1264_v27 = vpack.c.bf16 %v534_v25, %v533_v24  ;;  %v517_v28 = vld [vmem:[#allocation6 + $0x2a0] sm:$0xff]  ;;  %v518_v29 = vld [vmem:[#allocation6 + $0x2a8] sm:$0xff]  ;;  %v536_v37 = vld [vmem:[#allocation6 + $0x338] sm:$0xff] }
  0x79   : > { %1234 = vmatpush3.bf16.msra.mxu0 %v1233_v40  ;;  %1130 = vmatprep.mubr.msk.f32.mxu0 %vm1542_vm0, %v1540_v0  ;;  %v565_v30 = vld [vmem:[#allocation6 + $0x420] sm:$0xff]  ;;  %v566_v31 = vld [vmem:[#allocation6 + $0x428] sm:$0xff]  ;;  %v1266_v34 = vpack.c.bf16 %v518_v29, %v517_v28  ;;  %v519_v38 = vld [vmem:[#allocation6 + $0x2b0] sm:$0xff]  ;;  %v1268_v40 = vpack.c.bf16 %v536_v37, %v535_v36 }
  0x7a   : > { %431 = vmatmul.mubr.f32.vlgmr.msra.gmra.mrb[0].mxu1 %v202_v13  ;;  %1235 = vmatprep.subr.bf16.mxu0 %v1541_v41  ;;  %v1290_v13 = vpack.c.bf16 %v546_v11, %v545_v10  ;;  %v549_v32 = vld [vmem:[#allocation6 + $0x3a0] sm:$0xff]  ;;  %v550_v33 = vld [vmem:[#allocation6 + $0x3a8] sm:$0xff]  ;;  %v1296_v35 = vpack.c.bf16 %v566_v31, %v565_v30  ;;  %v520_v42 = vld [vmem:[#allocation6 + $0x2b8] sm:$0xff] }
  0x7b   : > { %1259 = vmatpush3.bf16.msra.mxu1 %v1258_v8  ;;  %v1298_v39 = vpack.c.bf16 %v550_v33, %v549_v32  ;;  %v567_v43 = vld [vmem:[#allocation6 + $0x430] sm:$0xff]  ;;  %v537_v48 = vld [vmem:[#allocation6 + $0x340] sm:$0xff]  ;;  %v538_v49 = vld [vmem:[#allocation6 + $0x348] sm:$0xff] }
  0x7c   : > { %1261 = vmatprep.subr.bf16.mxu1 %v1260_v17  ;;  %v551_v46 = vld [vmem:[#allocation6 + $0x3b0] sm:$0xff]  ;;  %v569_v51 = vld [vmem:[#allocation6 + $0x440] sm:$0xff]  ;;  %v570_v52 = vld [vmem:[#allocation6 + $0x448] sm:$0xff]  ;;  %v1272_v54 = vpack.c.bf16 %v538_v49, %v537_v48 }
  0x7d   : > { %1237 = vmatpush3.bf16.msra.mxu0 %v1236_v44  ;;  %v568_v44 = vld [vmem:[#allocation6 + $0x438] sm:$0xff]  ;;  %v521_v55 = vld [vmem:[#allocation6 + $0x2c0] sm:$0xff]  ;;  %v1304_v58 = vpack.c.bf16 %v570_v52, %v569_v51  ;;  %v539_v60 = vld [vmem:[#allocation6 + $0x350] sm:$0xff] }
  0x7e   : > { %1238 = vmatprep.subr.bf16.mxu0 %v1541_v41  ;;  %v1300_v45 = vpack.c.bf16 %v568_v44, %v567_v43  ;;  %v553_v57 = vld [vmem:[#allocation6 + $0x3c0] sm:$0xff]  ;;  %v540_v61 = vld [vmem:[#allocation6 + $0x358] sm:$0xff]  ;;  %v523_v2 = vld [vmem:[#allocation6 + $0x2d0] sm:$0xff] }
  0x7f   : > { %1263 = vmatpush3.bf16.msra.mxu1 %v1262_v18  ;;  %v1276_v1 = vpack.c.bf16 %v540_v61, %v539_v60  ;;  %v524_v3 = vld [vmem:[#allocation6 + $0x2d8] sm:$0xff]  ;;  %v571_v4 = vld [vmem:[#allocation6 + $0x450] sm:$0xff]  ;;  %v541_v11 = vld [vmem:[#allocation6 + $0x360] sm:$0xff] }
  0x80   : > { %1265 = vmatprep.subr.bf16.mxu1 %v1264_v27  ;;  %v1278_v5 = vpack.c.bf16 %v524_v3, %v523_v2  ;;  %v572_v6 = vld [vmem:[#allocation6 + $0x458] sm:$0xff]  ;;  %v555_v7 = vld [vmem:[#allocation6 + $0x3d0] sm:$0xff]  ;;  %v542_v12 = vld [vmem:[#allocation6 + $0x368] sm:$0xff] }
  0x81   : > { %1240 = vmatpush3.bf16.msra.mxu0 %v1239_v47  ;;  %v552_v47 = vld [vmem:[#allocation6 + $0x3b8] sm:$0xff]  ;;  %v525_v14 = vld [vmem:[#allocation6 + $0x2e0] sm:$0xff]  ;;  %v526_v15 = vld [vmem:[#allocation6 + $0x2e8] sm:$0xff] }
  0x82   : > { %1241 = vmatprep.subr.bf16.mxu0 %v1541_v41  ;;  %v556_v8 = vld [vmem:[#allocation6 + $0x3d8] sm:$0xff]  ;;  %v573_v16 = vld [vmem:[#allocation6 + $0x460] sm:$0xff]  ;;  %v1282_v17 = vpack.c.bf16 %v526_v15, %v525_v14  ;;  %v574_v18 = vld [vmem:[#allocation6 + $0x468] sm:$0xff] }
  0x83   : > { %1267 = vmatpush3.bf16.msra.mxu1 %v1266_v34  ;;  %v1310_v10 = vpack.c.bf16 %v556_v8, %v555_v7  ;;  %v557_v19 = vld [vmem:[#allocation6 + $0x3e0] sm:$0xff]  ;;  %v558_v20 = vld [vmem:[#allocation6 + $0x3e8] sm:$0xff]  ;;  %v1312_v21 = vpack.c.bf16 %v574_v18, %v573_v16  ;;  %v543_v23 = vld [vmem:[#allocation6 + $0x370] sm:$0xff] }
  0x84   : > { %1269 = vmatprep.subr.bf16.mxu1 %v1268_v40  ;;  %v544_v24 = vld [vmem:[#allocation6 + $0x378] sm:$0xff]  ;;  %v527_v25 = vld [vmem:[#allocation6 + $0x2f0] sm:$0xff]  ;;  %v918_v36 = vld [vmem:[%s1794_s2] ss:$0 sm:$0xff] }
  0x85   : > { %1243 = vmatpush3.bf16.msra.mxu0 %v1242_v50  ;;  %v1270_v50 = vpack.c.bf16 %v520_v42, %v519_v38  ;;  %v528_v27 = vld [vmem:[#allocation6 + $0x2f8] sm:$0xff]  ;;  %v575_v28 = vld [vmem:[#allocation6 + $0x470] sm:$0xff]  ;;  %v577_v48 = vld [vmem:[#allocation6 + $0x480] sm:$0xff] }
  0x86   : > { %1244 = vmatprep.subr.bf16.mxu0 %v1541_v41  ;;  %v576_v29 = vld [vmem:[#allocation6 + $0x478] sm:$0xff]  ;;  %v1286_v30 = vpack.c.bf16 %v528_v27, %v527_v25  ;;  %v559_v32 = vld [vmem:[#allocation6 + $0x3f0] sm:$0xff]  ;;  %v578_v49 = vld [vmem:[#allocation6 + $0x488] sm:$0xff] }
  0x87   : > { %1271 = vmatpush3.bf16.msra.mxu1 %v1270_v50  ;;  %v1316_v31 = vpack.c.bf16 %v576_v29, %v575_v28  ;;  %v560_v33 = vld [vmem:[#allocation6 + $0x3f8] sm:$0xff]  ;;  %v1321_v50 = vpack.c.bf16 %v578_v49, %v577_v48  ;;  %v579_v51 = vld [vmem:[#allocation6 + $0x490] sm:$0xff]  ;;  %v920_v14 = vld [vmem:[%s1794_s2 + $0x1] ss:$0 sm:$0xff] }
  0x88   : > { %1273 = vmatprep.subr.bf16.mxu1 %v1272_v54  ;;  %v1318_v34 = vpack.c.bf16 %v560_v33, %v559_v32  ;;  %v580_v52 = vld [vmem:[#allocation6 + $0x498] sm:$0xff]  ;;  %v583_v60 = vld [vmem:[#allocation6 + $0x4b0] sm:$0xff] }
  0x89   : > { %1246 = vmatpush3.bf16.msra.mxu0 %v1245_v53  ;;  %v1302_v53 = vpack.c.bf16 %v552_v47, %v551_v46  ;;  %v584_v61 = vld [vmem:[#allocation6 + $0x4b8] sm:$0xff]  ;;  %v591_v8 = vld [vmem:[#allocation6 + $0x4f0] sm:$0xff] }
  0x8a   : > { %1247 = vmatprep.subr.bf16.mxu0 %v1541_v41  ;;  %v588_v3 = vld [vmem:[#allocation6 + $0x4d8] sm:$0xff] }
  0x8d   : > { %1249 = vmatpush3.bf16.msra.mxu0 %v1248_v56  ;;  %v522_v56 = vld [vmem:[#allocation6 + $0x2c8] sm:$0xff] }
  0x8e   : > { %1250 = vmatprep.subr.bf16.mxu0 %v1541_v41 }
  0x91   : > { %1252 = vmatpush3.bf16.msra.mxu0 %v1251_v59  ;;  %v554_v59 = vld [vmem:[#allocation6 + $0x3c8] sm:$0xff] }
  0x92   : > { %1253 = vmatprep.subr.bf16.mxu0 %v1541_v41 }
  0x95   : > { %1255 = vmatpush3.bf16.msra.mxu0 %v1254_v62  ;;  %v1274_v62 = vpack.c.bf16 %v522_v56, %v521_v55  ;;  %v1324_v56 = vpack.c.bf16 %v580_v52, %v579_v51 }
  0x96   : > { %1289 = vmatprep.subr.bf16.mxu0 %v1288_v9  ;;  %v1308_v9 = vpack.c.bf16 %v572_v6, %v571_v4  ;;  %v590_v6 = vld [vmem:[#allocation6 + $0x4e8] sm:$0xff] }
  0x97   : > { %1275 = vmatpush3.bf16.msra.mxu1 %v1274_v62  ;;  %v1330_v62 = vpack.c.bf16 %v584_v61, %v583_v60 }
  0x98   : > { %1131 = vmatmul.mubr.f32.vlgmr.msra.gmra.mrb[2].mxu0 %v208_v63  ;;  %v1306_v63 = vpack.c.bf16 %v554_v59, %v553_v57  ;;  %1277 = vmatprep.subr.bf16.mxu1 %v1276_v1  ;;  %v581_v57 = vld [vmem:[#allocation6 + $0x4a0] sm:$0xff]  ;;  %v586_v1 = vld [vmem:[#allocation6 + $0x4c8] sm:$0xff] }
  0x99   : > { %1291 = vmatpush3.bf16.msra.mxu0 %v1290_v13  ;;  %v1280_v13 = vpack.c.bf16 %v542_v12, %v541_v11 }
  0x9a   : > { %1293 = vmatprep.subr.bf16.mxu0 %v1292_v22  ;;  %v1314_v22 = vpack.c.bf16 %v558_v20, %v557_v19 }
  0x9b   : > { %1279 = vmatpush3.bf16.msra.mxu1 %v1278_v5  ;;  %v589_v5 = vld [vmem:[#allocation6 + $0x4e0] sm:$0xff] }
  0x9c   : > { %1281 = vmatprep.subr.bf16.mxu1 %v1280_v13  ;;  %v1339_v7 = vpack.c.bf16 %v590_v6, %v589_v5 }
  0x9d   : > { %1295 = vmatpush3.bf16.msra.mxu0 %v1294_v26  ;;  %v1284_v26 = vpack.c.bf16 %v544_v24, %v543_v23 }
  0x9e   : > { %1297 = vmatprep.subr.bf16.mxu0 %v1296_v35 }
  0x9f   : > { %1283 = vmatpush3.bf16.msra.mxu1 %v1282_v17 }
  0xa0   : > { %1285 = vmatprep.subr.bf16.mxu1 %v1284_v26 }
  0xa1   : > { %1299 = vmatpush3.bf16.msra.mxu0 %v1298_v39 }
  0xa2   : > { %1301 = vmatprep.subr.bf16.mxu0 %v1300_v45 }
  0xa3   : > { %1287 = vmatpush3.bf16.msra.mxu1 %v1286_v30 }
  0xa4   : > { %1320 = vmatprep.subr.bf16.mxu1 %v1541_v41 }
  0xa5   : > { %1303 = vmatpush3.bf16.msra.mxu0 %v1302_v53 }
  0xa6   : > { %1305 = vmatprep.subr.bf16.mxu0 %v1304_v58  ;;  %v582_v58 = vld [vmem:[#allocation6 + $0x4a8] sm:$0xff] }
  0xa7   : > { %v1327_v59 = vpack.c.bf16 %v582_v58, %v581_v57 }
  0xa9   : > { %1307 = vmatpush3.bf16.msra.mxu0 %v1306_v63  ;;  %v585_v63 = vld [vmem:[#allocation6 + $0x4c0] sm:$0xff] }
  0xaa   : > { %1309 = vmatprep.subr.bf16.mxu0 %v1308_v9  ;;  %v1333_v2 = vpack.c.bf16 %v586_v1, %v585_v63  ;;  %v592_v9 = vld [vmem:[#allocation6 + $0x4f8] sm:$0xff] }
  0xad   : > { %1311 = vmatpush3.bf16.msra.mxu0 %v1310_v10  ;;  %v1342_v10 = vpack.c.bf16 %v592_v9, %v591_v8 }
  0xae   : > { %1313 = vmatprep.subr.bf16.mxu0 %v1312_v21 }
  0xb1   : > { %1315 = vmatpush3.bf16.msra.mxu0 %v1314_v22 }
  0xb2   : > { %1317 = vmatprep.subr.bf16.mxu0 %v1316_v31 }
  0xb5   : > { %1319 = vmatpush3.bf16.msra.mxu0 %v1318_v34 }
 0x14b   : > { %v956_v35 = vpop.f32.mrb[0].mxu0 }
 0x14c   : > { %v957_v37 = vpop.f32.mrb[1].mxu0 }
 0x14d   : > { %v991_v38 = vpop.f32.mrb[0].mxu1  ;;  %v958_v39 = vadd.f32 %v957_v37, %v956_v35 }
 0x14e   : > { %v992_v40 = vpop.f32.mrb[1].mxu1 }
 0x14f   : > { %v993_v42 = vadd.f32 %v992_v40, %v991_v38  ;;  %v363_v43 = vadd.f32 %v958_v39, %v918_v36 }
 0x151   : > { %v433_v44 = vadd.f32 %v993_v42, %v363_v43 }
 0x16b   : > { %v502_v45 = vpop.f32.mrb[2].mxu0 }
 0x16c   : > { %v503_v46 = vadd.f32 %v502_v45, %v433_v44  ;;  %v1132_v47 = vpop.f32.mrb[3].mxu0 }
 0x16e   : > { %506 = vst [vmem:[#allocation2 + $0x2] sm:$0xff] %v503_v46 }
 0x175   : > { %v508_v53 = vld [vmem:[#allocation2 + $0x1] sm:$0xff] }
 0x176   : > { %v510_v54 = vld [vmem:[#allocation2 + $0x3] sm:$0xff]  ;;  %665 = vmatprep.mubr.f32.mxu1 %v508_v53 }
 0x177   : > { %v507_v55 = vld [vmem:[#allocation2] sm:$0xff]  ;;  %735 = vmatprep.mubr.f32.mxu0 %v510_v54 }
 0x178   : > { %666 = vmatmul.mubr.f32.vlgmr.msra.gmra.mrb[2].mxu1 %v507_v55  ;;  %736 = vmatmul.mubr.f32.vlgmr.msra.gmra.mrb[4].mxu0 %v503_v46  ;;  %v511_v11 = vld [vmem:[#allocation2 + $0x4] sm:$0xff] }
 0x179   : > { %1322 = vmatpush3.bf16.msra.mxu1 %v1321_v50  ;;  %1165 = vmatprep.mubr.msk.f32.mxu1 %vm1542_vm0, %v1540_v0  ;;  %v587_v0 = vld [vmem:[#allocation6 + $0x4d0] sm:$0xff] }
 0x17a   : > { %1323 = vmatprep.subr.bf16.mxu1 %v1541_v41  ;;  %v1336_v4 = vpack.c.bf16 %v588_v3, %v587_v0 }
 0x17d   : > { %1325 = vmatpush3.bf16.msra.mxu1 %v1324_v56 }
 0x17e   : > { %1326 = vmatprep.subr.bf16.mxu1 %v1541_v41 }
 0x181   : > { %1328 = vmatpush3.bf16.msra.mxu1 %v1327_v59 }
 0x182   : > { %1329 = vmatprep.subr.bf16.mxu1 %v1541_v41 }
 0x185   : > { %1331 = vmatpush3.bf16.msra.mxu1 %v1330_v62 }
 0x186   : > { %1332 = vmatprep.subr.bf16.mxu1 %v1541_v41 }
 0x189   : > { %1334 = vmatpush3.bf16.msra.mxu1 %v1333_v2 }
 0x18a   : > { %1335 = vmatprep.subr.bf16.mxu1 %v1541_v41 }
 0x18d   : > { %1337 = vmatpush3.bf16.msra.mxu1 %v1336_v4 }
 0x18e   : > { %1338 = vmatprep.subr.bf16.mxu1 %v1541_v41 }
 0x191   : > { %1340 = vmatpush3.bf16.msra.mxu1 %v1339_v7 }
 0x192   : > { %1341 = vmatprep.subr.bf16.mxu1 %v1541_v41 }
 0x195   : > { %1343 = vmatpush3.bf16.msra.mxu1 %v1342_v10 }
 0x198   : > { %1166 = vmatmul.mubr.f32.vlgmr.msra.gmra.mrb[4].mxu1 %v511_v11 }
 0x24b   : > { %v1043_v12 = vpop.f32.mrb[2].mxu1  ;;  %v1078_v13 = vpop.f32.mrb[4].mxu0 }
 0x24c   : > { %v1044_v15 = vpop.f32.mrb[3].mxu1  ;;  %v1079_v16 = vpop.f32.mrb[5].mxu0 }
 0x24d   : > { %v1045_v17 = vadd.f32 %v1044_v15, %v1043_v12  ;;  %v1080_v18 = vadd.f32 %v1079_v16, %v1078_v13 }
 0x24f   : > { %v668_v19 = vadd.f32 %v1045_v17, %v920_v14 }
 0x251   : > { %v738_v20 = vadd.f32 %v1080_v18, %v668_v19 }
 0x26b   : > { %v807_v21 = vpop.f32.mrb[4].mxu1 }
 0x26c   : > { %v808_v41 = vadd.f32 %v807_v21, %v738_v20  ;;  %v1167_v22 = vpop.f32.mrb[5].mxu1 }
 0x26e   : > { %811 = vst [vmem:[#allocation2 + $0x2] sm:$0xff] %v808_v41  ;;  %v813_v23 = vrot.slane %v808_v41, 4 }
 0x270   : > { %v814_v24 = vadd.f32 %v813_v23, %v808_v41 }
 0x272   : > { %v815_v25 = vrot.slane %v814_v24, 2 }
 0x274   : > { %v816_v26 = vadd.f32 %v815_v25, %v814_v24 }
 0x276   : > { %v817_v27 = vrot.slane %v816_v26, 1 }
 0x278   : > { %v818_v28 = vadd.f32 %v817_v27, %v816_v26 }
 0x27a   : > { %819 = vst [vmem:[%s199_s5] sm:$0x1] %v818_v28 }
 0x27b   : > { %1477 = shalt.err (!%p1474_p7)
}
 0x27c   : > { %s1478_s30 = scalar_lea.hbm %s1748_s11, 16  ;;  %s1482_s7 = scalar_lea.hbm %s1795_s3, 32 }
 0x27d   : > { %p1479_p9 = scmp.ne.s32.totalorder %s1748_s11, %s1478_s30  ;;  %p1483_p0 = scmp.lt.u32.totalorder %s1748_s11, %s1795_s3 }
 0x27e   : > { %p1484_p11 = scmp.lt.u32.totalorder %s1482_s7, %s1478_s30  ;;  %p1486_p4 = scmp.lt.u32.totalorder %s1478_s30, %s1748_s11 }
 0x27f   : > { %p1480_p2 = pnand %p1479_p9, %p1655_p12 }
 0x280   : > { %p1485_p1 = por %p1484_p11, %p1483_p0 }
 0x281   : > { %p1481_p5 = pneg %p1480_p2 }
 0x282   : > { %p1487_p6 = por %p1486_p4, %p1485_p1 }
 0x284   : > { %p1488_p8 = pnand %p1487_p6, %p1481_p5 }
 0x286   : > { %1491 = shalt.err (!%p1488_p8)
}
 0x287   : > { %1350 = dma.vmem_to_hbm [thread:$0]  (%p1655_p12), %s1750_s8, 16, %s1748_s11, %s821_s27  }
 0x288 PF: > { %s845_s4 = sand.u32 1, %s1522_s12   ;;  %p1810_p10 = scmp.ne.s32.totalorder %s1800_s19, 0 }
 0x289   : > { %p1811_p13 = scmp.ge.s32.totalorder %s1534_s15, 2  ;;  %s846_s25 = scalar_lea.sflag [#allocation5], %s845_s4 }
 0x28b   : > { %p1361_p3 = pnand %p1811_p13, %p1810_p10 }
 0x28d   : > { %1517 = dma.done.wait (!%p1361_p3), %s846_s25, 16  }
 0x28e   : > { %1519 = vsyncadd (!%p1361_p3), %s846_s25, 4294967280  ;;  %p17_p7 = scmp.ge.s32.totalorder %s1620_s24, 4   ;;  %s1812_s12 = smov %s1526_s13 }
 0x28f   : > { %s1813_s13 = smov %s1530_s14  ;;  %s1814_s14 = smov %s1651_s17 }
 0x290   : > { %s1815_s15 = smov %s1620_s24  ;;  %19 = sbr.rel (!%p17_p7) target bundleno = 6 (0x6), region = 83 }
 0x297   :  { %850 = vsyncpa [#allocation4], 1 }
 0x298   :  { %852 = vsyncpa [#allocation4 + $0x1], 1 }
 0x299   :  { %853 = vsyncpa [#allocation7], 1 }
 0x29a   :  { %854 = vsyncpa [#allocation5], 1 }
 0x29b   :  { %856 = vsyncpa [#allocation5 + $0x1], 1 }

</bundles_post_ra>
